<compile_context>
chip_gen: v7x
topology: tpu7x:2x2x1
jax: 0.10.0
libtpu: 0.0.40
codegen_flags: <defaults>
</compile_context>

<pallas_src>
import functools

import jax
import jax.numpy as jnp
from jax import lax
from jax.experimental import pallas as pl
from jax.experimental.pallas import tpu as pltpu


def _round_up(x, m):
    return ((x + m - 1) // m) * m


def _cdiv(a, b):
    return (a + b - 1) // b


def _classifier_kernel(x_ref, w1_ref, b1_ref, w2_ref, b2_ref, out_ref, *,
                       chunk_pack, num_chunks, compute_dtype):
    # x_ref  : (tm_pack, H*p) input dtype  - packed, lane-dense view of x rows
    # w1_ref : (H*p, H*p)  compute_dtype   - kron(I_p, lin1.weight.T), resident
    # b1_ref : (1, H*p)    f32
    # w2_ref : (H*p, O*p)  compute_dtype   - kron(I_p, lin2.weight.T), resident
    # b2_ref : (1, O*p)    f32
    # out_ref: (tm_pack, O*p) out dtype    - packed view of the (tm, O) result
    w1 = w1_ref[...]
    w2 = w2_ref[...]
    b1 = b1_ref[...]
    b2 = b2_ref[...]

    def body(c, carry):
        off = pl.multiple_of(c * chunk_pack, chunk_pack)
        # Cast on the VPU (cheap; kernel is HBM-bound) -> MXU matmul, f32 acc.
        x = x_ref[pl.ds(off, chunk_pack), :].astype(compute_dtype)
        h = jnp.dot(x, w1, preferred_element_type=jnp.float32)
        h = jnp.maximum(h + b1, 0.0)                       # f32 bias + ReLU
        y = jnp.dot(h.astype(compute_dtype), w2,
                    preferred_element_type=jnp.float32) + b2
        out_ref[pl.ds(off, chunk_pack), :] = y.astype(out_ref.dtype)
        return carry

    lax.fori_loop(0, num_chunks, body, 0, unroll=num_chunks <= 8)


def classifier_forward(x, w1_t, b1, w2_t, b2, *, tm=8192, chunk=2048,
                       compute_dtype=jnp.bfloat16, out_dtype=None):
    """forward(x) = relu(x @ w1_t + b1) @ w2_t + b2 for an (N, H) node matrix.

    w1_t = lin1.weight.T (H, H); w2_t = lin2.weight.T (H, O).
    Returns (N, O) in `out_dtype` (defaults to x.dtype).
    `tm`    : logical rows of x per grid step (DMA grain; make it big).
    `chunk` : logical rows per in-kernel compute chunk (bounds intermediates).
    """
    N, H = x.shape
    O = w2_t.shape[1]
    out_dtype = x.dtype if out_dtype is None else out_dtype

    # Lane-dense packing factor: p consecutive logical rows share one 128-lane
    # row.  Falls back to p=1 when H does not divide 128.
    p = 128 // H if (H <= 128 and 128 % H == 0) else 1
    N_pad = _round_up(N, p)
    if N_pad != N:
        # Rare misaligned-N path; costs one pad pass over x.
        x = jnp.pad(x, ((0, N_pad - N), (0, 0)))
    Hp, Op = H * p, O * p
    N_pack = N_pad // p

    # Free, row-major-contiguous reshape (bitcast in XLA): (N_pad, H) -> (N_pack, H*p).
    x_view = x.reshape(N_pack, Hp)

    # Block-diagonal weight expansion keeps the p packed row-segments independent.
    eye = jnp.eye(p, dtype=jnp.float32)
    w1_bd = jnp.kron(eye, w1_t.astype(jnp.float32)).astype(compute_dtype)
    w2_bd = jnp.kron(eye, w2_t.astype(jnp.float32)).astype(compute_dtype)
    b1_bd = jnp.tile(b1.astype(jnp.float32), p).reshape(1, Hp)
    b2_bd = jnp.tile(b2.astype(jnp.float32), p).reshape(1, Op)

    # ---- tile / chunk selection (in packed-row units, sublane aligned) ----
    tm_pack = max(8, _round_up(max(tm, 1), 8 * p) // p)
    chunk_pack = max(8, _round_up(max(chunk, 1), 8 * p) // p)
    chunk_pack = min(chunk_pack, tm_pack)
    tm_pack = _round_up(tm_pack, chunk_pack)
    # Don't allocate a tile much larger than the data (still one partial block).
    tm_pack = min(tm_pack, _round_up(N_pack, chunk_pack))
    # Prefer >=2 grid steps when the data is big enough (v7x megacore balance).
    if N_pack > 2 * chunk_pack:
        tm_pack = min(tm_pack, _round_up(_cdiv(N_pack, 2), chunk_pack))
    num_chunks = tm_pack // chunk_pack
    grid_m = _cdiv(N_pack, tm_pack)   # ragged tail -> partial block, masked

    kernel = functools.partial(_classifier_kernel,
                               chunk_pack=chunk_pack,
                               num_chunks=num_chunks,
                               compute_dtype=compute_dtype)

    cd_size = jnp.dtype(compute_dtype).itemsize
    cost = pl.CostEstimate(
        flops=2 * N_pad * H * (H + O),
        transcendentals=0,
        bytes_accessed=(N_pad * H * x.dtype.itemsize                 # x read
                        + N_pad * O * jnp.dtype(out_dtype).itemsize  # out write
                        + (Hp * Hp + Hp * Op) * cd_size              # weights
                        + (Hp + Op) * 4),                            # biases
    )

    out_packed = pl.pallas_call(
        kernel,
        out_shape=jax.ShapeDtypeStruct((N_pack, Op), out_dtype),
        grid_spec=pltpu.PrefetchScalarGridSpec(
            num_scalar_prefetch=0,
            grid=(grid_m,),
            in_specs=[
                pl.BlockSpec((tm_pack, Hp), lambda i: (i, 0)),  # x (streamed)
                pl.BlockSpec((Hp, Hp), lambda i: (0, 0)),       # W1 bd (resident)
                pl.BlockSpec((1, Hp), lambda i: (0, 0)),        # b1
                pl.BlockSpec((Hp, Op), lambda i: (0, 0)),       # W2 bd (resident)
                pl.BlockSpec((1, Op), lambda i: (0, 0)),        # b2
            ],
            out_specs=pl.BlockSpec((tm_pack, Op), lambda i: (i, 0)),
        ),
        compiler_params=pltpu.CompilerParams(
            dimension_semantics=("parallel",),      # v7x: rows over both TCs
            vmem_limit_bytes=64 * 1024 * 1024),     # headroom for large tm on v5e
        cost_estimate=cost,
    )(x_view, w1_bd, b1_bd, w2_bd, b2_bd)

    # Free reshape back to logical row-major (N_pad, O), then drop padding rows.
    out = out_packed.reshape(N_pad, O)
    return out[:N] if N_pad != N else out


if __name__ == "__main__":
    # Small shapes consistent with the module: N nodes, hidden=32, out=8.
    # N is not a tile multiple so the ragged last block is exercised.
    N, hidden_channels, out_channels = 1000, 32, 8

    key = jax.random.PRNGKey(0)
    kx, k1, k2, k3, k4 = jax.random.split(key, 5)

    x = jax.random.normal(kx, (N, hidden_channels), dtype=jnp.float32)

    # PyTorch Linear weight is (out_features, in_features); the kernel takes
    # the transposed copies for the x @ W^T convention.
    w1_t = (jax.random.normal(k1, (hidden_channels, hidden_channels),
                              dtype=jnp.float32) * 0.1)
    b1 = jax.random.normal(k2, (hidden_channels,), dtype=jnp.float32) * 0.1
    w2_t = (jax.random.normal(k3, (hidden_channels, out_channels),
                              dtype=jnp.float32) * 0.1)
    b2 = jax.random.normal(k4, (out_channels,), dtype=jnp.float32) * 0.1

    # Small tiles here so the demo exercises a multi-step grid, the ragged last
    # block and a multi-chunk inner loop; production node counts should use the
    # defaults (tm=8192, chunk=2048) or larger.
    out = classifier_forward(x, w1_t, b1, w2_t, b2, tm=512, chunk=256)
    out = jax.block_until_ready(out)

    # Pure-JAX reference mirroring the kernel's bf16-weight / f32-accumulate path.
    xb = x.astype(jnp.bfloat16)
    w1b = w1_t.astype(jnp.bfloat16)
    w2b = w2_t.astype(jnp.bfloat16)
    h = jnp.maximum(jnp.dot(xb, w1b, preferred_element_type=jnp.float32) + b1, 0.0)
    ref = jnp.dot(h.astype(jnp.bfloat16), w2b,
                  preferred_element_type=jnp.float32) + b2

    assert out.shape == (N, out_channels), out.shape
    err = float(jnp.max(jnp.abs(out - ref)))
    assert err < 2e-2, err

    print("KERNEL_OK")
</pallas_src>

<mosaic_0001>
module attributes {stable_mosaic.version = 11 : i64} {
  func.func @_classifier_kernel(%arg0: i32, %arg1: memref<128x128xf32, #tpu.memory_space<vmem>>, %arg2: memref<128x128xbf16, #tpu.memory_space<vmem>>, %arg3: memref<1x128xf32, #tpu.memory_space<vmem>>, %arg4: memref<128x32xbf16, #tpu.memory_space<vmem>>, %arg5: memref<1x32xf32, #tpu.memory_space<vmem>>, %arg6: memref<128x32xf32, #tpu.memory_space<vmem>>) attributes {dimension_semantics = [#tpu.dimension_semantics<parallel>], iteration_bounds = array<i64: 2>, scalar_prefetch = 0 : i64, scratch_operands = 0 : i64, tpu.core_type = #tpu.core_type<tc>, window_params = [{transform_indices = @transform_0, window_bounds = array<i64: 128, 128>}, {pipeline_mode = #tpu.pipeline_mode<synchronous>, transform_indices = @transform_1, window_bounds = array<i64: 128, 128>}, {pipeline_mode = #tpu.pipeline_mode<synchronous>, transform_indices = @transform_2, window_bounds = array<i64: 1, 128>}, {pipeline_mode = #tpu.pipeline_mode<synchronous>, transform_indices = @transform_3, window_bounds = array<i64: 128, 32>}, {pipeline_mode = #tpu.pipeline_mode<synchronous>, transform_indices = @transform_4, window_bounds = array<i64: 1, 32>}, {transform_indices = @transform_5, window_bounds = array<i64: 128, 32>}]} {
    %c0 = arith.constant 0 : index
    %c0_0 = arith.constant 0 : index
    %0 = vector.load %arg2[%c0, %c0_0] : memref<128x128xbf16, #tpu.memory_space<vmem>>, vector<128x128xbf16>
    %c0_1 = arith.constant 0 : index
    %c0_2 = arith.constant 0 : index
    %1 = vector.load %arg4[%c0_1, %c0_2] : memref<128x32xbf16, #tpu.memory_space<vmem>>, vector<128x32xbf16>
    %c0_3 = arith.constant 0 : index
    %c0_4 = arith.constant 0 : index
    %2 = vector.load %arg3[%c0_3, %c0_4] : memref<1x128xf32, #tpu.memory_space<vmem>>, vector<1x128xf32>
    %c0_5 = arith.constant 0 : index
    %c0_6 = arith.constant 0 : index
    %3 = vector.load %arg5[%c0_5, %c0_6] : memref<1x32xf32, #tpu.memory_space<vmem>>, vector<1x32xf32>
    %c0_i32 = arith.constant 0 : i32
    %c64_i32 = arith.constant 64 : i32
    %4 = arith.muli %c0_i32, %c64_i32 : i32
    %5 = tpu.assume_multiple %4, 64 : i32
    %6 = arith.index_cast %5 : i32 to index
    %c0_7 = arith.constant 0 : index
    %7 = vector.load %arg1[%6, %c0_7] : memref<128x128xf32, #tpu.memory_space<vmem>>, vector<64x128xf32>
    %8 = arith.truncf %7 : vector<64x128xf32> to vector<64x128xbf16>
    %cst = arith.constant dense<0.000000e+00> : vector<64x128xf32>
    %9 = tpu.matmul %8, %0, %cst {dimension_numbers = #tpu.dot_dimension_numbers<[1], [0], [0], [1], [0, 0, 1, 1], [], []>} : vector<64x128xbf16>, vector<128x128xbf16>, vector<64x128xf32> -> vector<64x128xf32>
    %10 = vector.broadcast %2 : vector<1x128xf32> to vector<64x128xf32>
    %11 = arith.addf %9, %10 : vector<64x128xf32>
    %cst_8 = arith.constant 0.000000e+00 : f32
    %12 = vector.broadcast %cst_8 : f32 to vector<64x128xf32>
    %13 = arith.maximumf %11, %12 : vector<64x128xf32>
    %14 = arith.truncf %13 : vector<64x128xf32> to vector<64x128xbf16>
    %cst_9 = arith.constant dense<0.000000e+00> : vector<64x32xf32>
    %15 = tpu.matmul %14, %1, %cst_9 {dimension_numbers = #tpu.dot_dimension_numbers<[1], [0], [0], [1], [0, 0, 1, 1], [], []>} : vector<64x128xbf16>, vector<128x32xbf16>, vector<64x32xf32> -> vector<64x32xf32>
    %16 = vector.broadcast %3 : vector<1x32xf32> to vector<64x32xf32>
    %17 = arith.addf %15, %16 : vector<64x32xf32>
    %18 = arith.index_cast %5 : i32 to index
    %c0_10 = arith.constant 0 : index
    %19 = vector.load %arg6[%18, %c0_10] : memref<128x32xf32, #tpu.memory_space<vmem>>, vector<64x32xf32>
    tpu.vector_store %arg6[%18, %c0_10], %17 {strides = array<i32>} : memref<128x32xf32, #tpu.memory_space<vmem>>, vector<64x32xf32>,
    %c1_i32 = arith.constant 1 : i32
    %c64_i32_11 = arith.constant 64 : i32
    %20 = arith.muli %c1_i32, %c64_i32_11 : i32
    %21 = tpu.assume_multiple %20, 64 : i32
    %22 = arith.index_cast %21 : i32 to index
    %c0_12 = arith.constant 0 : index
    %23 = vector.load %arg1[%22, %c0_12] : memref<128x128xf32, #tpu.memory_space<vmem>>, vector<64x128xf32>
    %24 = arith.truncf %23 : vector<64x128xf32> to vector<64x128xbf16>
    %cst_13 = arith.constant dense<0.000000e+00> : vector<64x128xf32>
    %25 = tpu.matmul %24, %0, %cst_13 {dimension_numbers = #tpu.dot_dimension_numbers<[1], [0], [0], [1], [0, 0, 1, 1], [], []>} : vector<64x128xbf16>, vector<128x128xbf16>, vector<64x128xf32> -> vector<64x128xf32>
    %26 = vector.broadcast %2 : vector<1x128xf32> to vector<64x128xf32>
    %27 = arith.addf %25, %26 : vector<64x128xf32>
    %cst_14 = arith.constant 0.000000e+00 : f32
    %28 = vector.broadcast %cst_14 : f32 to vector<64x128xf32>
    %29 = arith.maximumf %27, %28 : vector<64x128xf32>
    %30 = arith.truncf %29 : vector<64x128xf32> to vector<64x128xbf16>
    %cst_15 = arith.constant dense<0.000000e+00> : vector<64x32xf32>
    %31 = tpu.matmul %30, %1, %cst_15 {dimension_numbers = #tpu.dot_dimension_numbers<[1], [0], [0], [1], [0, 0, 1, 1], [], []>} : vector<64x128xbf16>, vector<128x32xbf16>, vector<64x32xf32> -> vector<64x32xf32>
    %32 = vector.broadcast %3 : vector<1x32xf32> to vector<64x32xf32>
    %33 = arith.addf %31, %32 : vector<64x32xf32>
    %34 = arith.index_cast %21 : i32 to index
    %c0_16 = arith.constant 0 : index
    %35 = vector.load %arg6[%34, %c0_16] : memref<128x32xf32, #tpu.memory_space<vmem>>, vector<64x32xf32>
    tpu.vector_store %arg6[%34, %c0_16], %33 {strides = array<i32>} : memref<128x32xf32, #tpu.memory_space<vmem>>, vector<64x32xf32>,
    %c2_i32 = arith.constant 2 : i32
    return
  }
  func.func @transform_0(%arg0: i32) -> (i32, i32) {
    %c0_i32 = arith.constant 0 : i32
    %c0_i32_0 = arith.constant 0 : i32
    return %arg0, %c0_i32 : i32, i32
  }
  func.func @transform_1(%arg0: i32) -> (i32, i32) {
    %c0_i32 = arith.constant 0 : i32
    %c0_i32_0 = arith.constant 0 : i32
    %c0_i32_1 = arith.constant 0 : i32
    return %c0_i32, %c0_i32_0 : i32, i32
  }
  func.func @transform_2(%arg0: i32) -> (i32, i32) {
    %c0_i32 = arith.constant 0 : i32
    %c0_i32_0 = arith.constant 0 : i32
    %c0_i32_1 = arith.constant 0 : i32
    return %c0_i32, %c0_i32_0 : i32, i32
  }
  func.func @transform_3(%arg0: i32) -> (i32, i32) {
    %c0_i32 = arith.constant 0 : i32
    %c0_i32_0 = arith.constant 0 : i32
    %c0_i32_1 = arith.constant 0 : i32
    return %c0_i32, %c0_i32_0 : i32, i32
  }
  func.func @transform_4(%arg0: i32) -> (i32, i32) {
    %c0_i32 = arith.constant 0 : i32
    %c0_i32_0 = arith.constant 0 : i32
    %c0_i32_1 = arith.constant 0 : i32
    return %c0_i32, %c0_i32_0 : i32, i32
  }
  func.func @transform_5(%arg0: i32) -> (i32, i32) {
    %c0_i32 = arith.constant 0 : i32
    %c0_i32_0 = arith.constant 0 : i32
    return %arg0, %c0_i32 : i32, i32
  }
}

</mosaic_0001>

<bundles_post_ra>
// kernel: tpu_custom_call.1
= control target key start
LH: loop header
LB: loop body
LE: loop exit
PB: predicated region body
PF: predicated region fallthrough
CT: control target
= control target key end

     0   :  { %10 = vsyncpa [#allocation3], 0  ;;  %s1859_s0 = inlined_call_operand.hbm [shape: f32[250,128], index: 0, kind: input, shape index: {}]   ;;  %s1860_s1 = inlined_call_operand.hbm [shape: bf16[128,128], index: 1, kind: input, shape index: {}]   ;;  %s1861_s2 = inlined_call_operand.hbm [shape: f32[1,128], index: 2, kind: input, shape index: {}]   ;;  %s1862_s3 = inlined_call_operand.hbm [shape: bf16[128,32], index: 3, kind: input, shape index: {}]   ;;  %s1863_s4 = inlined_call_operand.hbm [shape: f32[1,32], index: 4, kind: input, shape index: {}]   ;;  %s1864_s5 = inlined_call_operand.hbm [shape: f32[250,32], index: 5, kind: output, shape index: {}]  }
   0x1   :  { %12 = vsyncpa [#allocation3 + $0x1], 0 }
   0x2   :  { %13 = vsyncpa [#allocation6], 0 }
   0x3   :  { %14 = vsyncpa [#allocation9], 0 }
   0x4   :  { %15 = vsyncpa [#allocation4], 0 }
   0x5   :  { %17 = vsyncpa [#allocation4 + $0x1], 0  ;;  %s1465_s18 = smov 0   ;;  %s1467_s19 = smov 0  }
   0x6   :  { %s1469_s20 = smov 0   ;;  %s1471_s21 = smov 0  }
   0x7 LB: > { %s1486_s22 = sadd.s32 4294967295, %s1421_s21   ;;  %s894_s23 = sadd.s32 4294967294, %s1421_s21   ;;  %s1421_s21 = sphi %s1471_s21, %s1887_s21   ;;  %s1417_s20 = sphi %s1469_s20, %s1886_s20   ;;  %s1413_s19 = sphi %s1467_s19, %s1885_s19   ;;  %s1409_s18 = sphi %s1465_s18, %s1884_s18  }
   0x8   : > { %p43_p0 = scmp.ne.s32.totalorder %s1413_s19, %s1409_s18  ;;  %p1865_p1 = scmp.eq.s32.totalorder %s1486_s22, 0 }
   0x9   : > { %p157_p3 = scmp.eq.s32.totalorder %s894_s23, 1  ;;  %p895_p5 = scmp.ge.s32.totalorder %s1421_s21, 1 }
   0xa   : > { %p1495_p4 = por %p1865_p1, %p43_p0  ;;  %p164_p7 = scmp.lt.s32.totalorder %s1421_s21, 3 }
   0xb   : > { %p1500_p6 = por %p157_p3, %p43_p0  ;;  %s1423_s27 = smov [#allocation5]  }
   0xc   : > { %s1868_s24 = scalar_select %p1495_p4, 1, 0 }
   0xd   : > { %s1869_s25 = scalar_select %p1500_p6, 1, 0 }
   0xe   : > { %p1505_p8 = pnand %p895_p5, %p164_p7  ;;  %s176_s28 = sshll.u32 %s1423_s27, 4  ;;  %s1509_s28 = int_to_ptr.vmem [resolvable:$true] %s176_s28 }
   0xf   : > { %s1424_s30 = smov [#allocation8]   ;;  %s1425_s7 = smov [#allocation7]  }
  0x10   : > { %s1870_s26 = scalar_select %p1505_p8, 1, 0 }
  0x11   : > { %p1116_p9 = pneg %p1505_p8  ;;  %s200_s6 = sshll.u32 %s1424_s30, 4  ;;  %s1520_s6 = int_to_ptr.vmem [resolvable:$true] %s200_s6 }
  0x12   : > { %s1522_s8 = sshll.u32 %s1425_s7, 4  ;;  %s1205_s11 = scalar_lea.hbm %s1860_s1, 1024  ;;  %s191_s8 = int_to_ptr.vmem [resolvable:$true] %s1522_s8 }
  0x13   : > { %p1516_p11 = pnand %p1116_p9, %p1865_p1  ;;  %p1206_p12 = scmp.ne.s32.totalorder %s1860_s1, %s1205_s11 }
  0x14   : > { %p1212_p5 = scmp.lt.u32.totalorder %s1205_s11, %s1860_s1 }
  0x15   : > { %p1532_p13 = pneg %p1516_p11 }
  0x17   : > { %p1208_p0 = pnand %p1532_p13, %p1206_p12 }
  0x19   : > { %p1209_p3 = pneg %p1208_p0 }
  0x1b   : > { %p1214_p7 = pnand %p1212_p5, %p1209_p3 }
  0x1d   : > { %1217 = shalt.err (!%p1214_p7)
}
  0x1e   : > { %s1218_s17 = scalar_lea.vmem %s1509_s28, 1024  ;;  %p1226_p2 = scmp.lt.s32.totalorder %s1509_s28, %s1509_s28 }
  0x1f   : > { %p1219_p9 = scmp.ne.s32.totalorder %s1509_s28, %s1218_s17  ;;  %p1227_p6 = scmp.lt.s32.totalorder %s1218_s17, %s1218_s17 }
  0x21   : > { %p1221_p10 = pnand %p1219_p9, %p1532_p13  ;;  %p1228_p12 = por %p1227_p6, %p1226_p2 }
  0x23   : > { %p1222_p1 = pneg %p1221_p10 }
  0x25   : > { %p1229_p0 = pnand %p1228_p12, %p1222_p1 }
  0x27   : > { %1232 = shalt.err (!%p1229_p0)
}
  0x28   : > { %s1426_s23 = smov 64   ;;  %s1427_s27 = smov 4  }
  0x29   : > { %1119 = dma.hbm_to_vmem [thread:$0]  (!%p1516_p11), %s1860_s1, 1024, %s1509_s28, [#allocation6], %s1426_s23, %s1426_s23, %s1427_s27  }
  0x2a   : > { %s1233_s11 = scalar_lea.hbm %s1862_s3, 1024 }
  0x2b   : > { %p1234_p2 = scmp.ne.s32.totalorder %s1862_s3, %s1233_s11  ;;  %p1240_p10 = scmp.lt.u32.totalorder %s1233_s11, %s1862_s3 }
  0x2d   : > { %p1236_p1 = pnand %p1234_p2, %p1532_p13 }
  0x2f   : > { %p1237_p6 = pneg %p1236_p1 }
  0x31   : > { %p1242_p3 = pnand %p1240_p10, %p1237_p6 }
  0x33   : > { %1245 = shalt.err (!%p1242_p3)
}
  0x34   : > { %s1246_s28 = scalar_lea.vmem %s1520_s6, 1024  ;;  %p1254_p12 = scmp.lt.s32.totalorder %s1520_s6, %s1520_s6 }
  0x35   : > { %p1247_p5 = scmp.ne.s32.totalorder %s1520_s6, %s1246_s28  ;;  %p1255_p0 = scmp.lt.s32.totalorder %s1246_s28, %s1246_s28 }
  0x37   : > { %p1249_p7 = pnand %p1247_p5, %p1532_p13  ;;  %p1256_p2 = por %p1255_p0, %p1254_p12 }
  0x39   : > { %p1250_p9 = pneg %p1249_p7 }
  0x3b   : > { %p1257_p1 = pnand %p1256_p2, %p1250_p9 }
  0x3d   : > { %1260 = shalt.err (!%p1257_p1)
}
  0x3e   : > { %1125 = dma.hbm_to_vmem [thread:$0]  (!%p1516_p11), %s1862_s3, 1024, %s1520_s6, [#allocation9], %s1426_s23, %s1426_s23, %s1427_s27  }
  0x3f   : > { %s1261_s10 = scalar_lea.hbm %s1861_s2, 16 }
  0x40   : > { %p1262_p6 = scmp.ne.s32.totalorder %s1861_s2, %s1261_s10  ;;  %p1268_p5 = scmp.lt.u32.totalorder %s1261_s10, %s1861_s2 }
  0x42   : > { %p1264_p10 = pnand %p1262_p6, %p1532_p13 }
  0x44   : > { %p1265_p3 = pneg %p1264_p10 }
  0x46   : > { %p1270_p7 = pnand %p1268_p5, %p1265_p3 }
  0x48   : > { %1273 = shalt.err (!%p1270_p7)
}
  0x49   : > { %s1274_s16 = scalar_lea.vmem %s191_s8, 16  ;;  %s1281_s6 = scalar_lea.vmem %s191_s8, 32 }
  0x4a   : > { %p1275_p9 = scmp.ne.s32.totalorder %s191_s8, %s1274_s16  ;;  %p1282_p2 = scmp.lt.s32.totalorder %s191_s8, %s191_s8 }
  0x4b   : > { %p1283_p1 = scmp.lt.s32.totalorder %s1281_s6, %s1274_s16 }
  0x4c   : > { %p1277_p12 = pnand %p1275_p9, %p1532_p13 }
  0x4d   : > { %p1284_p4 = por %p1283_p1, %p1282_p2 }
  0x4e   : > { %p1278_p0 = pneg %p1277_p12 }
  0x50   : > { %p1285_p8 = pnand %p1284_p4, %p1278_p0 }
  0x52   : > { %1288 = shalt.err (!%p1285_p8)
}
  0x53   : > { %1122 = dma.hbm_to_vmem [thread:$0]  (!%p1516_p11), %s1861_s2, 16, %s191_s8, [#allocation6]  }
  0x54   : > { %s1428_s28 = smov [#allocation10]   ;;  %s1289_s9 = scalar_lea.hbm %s1863_s4, 16 }
  0x55   : > { %s214_s17 = sshll.u32 %s1428_s28, 4  ;;  %p1290_p6 = scmp.ne.s32.totalorder %s1863_s4, %s1289_s9  ;;  %s215_s17 = int_to_ptr.vmem [resolvable:$true] %s214_s17 }
  0x56   : > { %p1296_p10 = scmp.lt.u32.totalorder %s1289_s9, %s1863_s4 }
  0x57   : > { %p1292_p4 = pnand %p1290_p6, %p1532_p13 }
  0x59   : > { %p1293_p8 = pneg %p1292_p4 }
  0x5b   : > { %p1298_p3 = pnand %p1296_p10, %p1293_p8 }
  0x5d   : > { %1301 = shalt.err (!%p1298_p3)
}
  0x5e   : > { %s1302_s8 = scalar_lea.vmem %s215_s17, 16  ;;  %s1309_s15 = scalar_lea.vmem %s215_s17, 32 }
  0x5f   : > { %p1303_p5 = scmp.ne.s32.totalorder %s215_s17, %s1302_s8  ;;  %p1310_p12 = scmp.lt.s32.totalorder %s215_s17, %s215_s17 }
  0x60   : > { %p1311_p0 = scmp.lt.s32.totalorder %s1309_s15, %s1302_s8 }
  0x61   : > { %p1305_p7 = pnand %p1303_p5, %p1532_p13 }
  0x62   : > { %p1312_p2 = por %p1311_p0, %p1310_p12 }
  0x63   : > { %p1306_p9 = pneg %p1305_p7 }
  0x65   : > { %p1313_p1 = pnand %p1312_p2, %p1306_p9 }
  0x67   : > { %1316 = shalt.err (!%p1313_p1)
}
  0x68   : > { %1128 = dma.hbm_to_vmem [thread:$0]  (!%p1516_p11), %s1863_s4, 16, %s215_s17, [#allocation9]  }
  0x69   : > { %s1614_s14 = sadd.s32 1, %s1421_s21   ;;  %s30_s23 = sadd.s32 1, %s1417_s20 }
  0x6a   : > { %s27_s29 = ssub.s32 %s1421_s21, %s1614_s14  ;;  %p37_p13 = scmp.ne.s32.totalorder %s1417_s20, %s1413_s19 }
  0x6b   : > { %p28_p6 = scmp.eq.s32.totalorder %s27_s29, 0  ;;  %p38_p4 = scmp.eq.s32.totalorder %s1421_s21, 0 }
  0x6c   : > { %p1873_p8 = scmp.eq.s32.totalorder %s1486_s22, 1  ;;  %p1141_p3 = scmp.lt.s32.totalorder %s1421_s21, 2 }
  0x6d   : > { %s1630_s28 = scalar_select %p28_p6, %s1417_s20, %s30_s23  }
  0x6e   : > { %p1624_p10 = por %p1873_p8, %p37_p13  ;;  %p39_p5 = por %p38_p4, %p37_p13 }
  0x6f   : > { %s225_s30 = sand.u32 1, %s1417_s20   ;;  %s950_s17 = sshll.u32 %s1421_s21, 11 }
  0x70   : > { %s901_s7 = sshll.u32 %s225_s30, 7  ;;  %s1637_s11 = scalar_lea.hbm %s1859_s0, %s950_s17 }
  0x71   : > { %s229_s12 = scalar_lea.vmem [#allocation2], %s901_s7  ;;  %p1641_p11 = pnand %p1141_p3, %p39_p5 }
  0x72   : > { %s236_s13 = sshll.u32 %s229_s12, 4  ;;  %s1645_s15 = scalar_lea.sflag [#allocation3], %s225_s30  ;;  %s1639_s13 = int_to_ptr.vmem [resolvable:$true] %s236_s13 }
  0x73   : > { %s1317_s16 = scalar_lea.hbm %s1637_s11, 2048  ;;  %p1319_p9 = pneg %p1641_p11 }
  0x74   : > { %p1318_p7 = scmp.ne.s32.totalorder %s1637_s11, %s1317_s16  ;;  %s1322_s29 = scalar_lea.hbm %s1859_s0, 4096 }
  0x75   : > { %p1323_p2 = scmp.lt.u32.totalorder %s1637_s11, %s1859_s0  ;;  %p1324_p1 = scmp.lt.u32.totalorder %s1322_s29, %s1317_s16 }
  0x76   : > { %p1320_p12 = pnand %p1319_p9, %p1318_p7  ;;  %p1326_p6 = scmp.lt.u32.totalorder %s1317_s16, %s1637_s11 }
  0x77   : > { %p1325_p13 = por %p1324_p1, %p1323_p2 }
  0x78   : > { %p1321_p0 = pneg %p1320_p12 }
  0x79   : > { %p1327_p4 = por %p1326_p6, %p1325_p13 }
  0x7b   : > { %p1328_p8 = pnand %p1327_p4, %p1321_p0 }
  0x7d   : > { %1331 = shalt.err (!%p1328_p8)
}
  0x7e   : > { %s1332_s30 = scalar_lea.vmem %s1639_s13, 2048  ;;  %s1429_s9 = smov [#allocation2]  }
  0x7f   : > { %p1333_p3 = scmp.ne.s32.totalorder %s1639_s13, %s1332_s30  ;;  %s1337_s10 = sshll.u32 %s1429_s9, 4  ;;  %s1338_s10 = int_to_ptr.vmem [resolvable:$false] %s1337_s10 }
  0x80   : > { %s1339_s12 = scalar_lea.vmem %s1338_s10, 4096  ;;  %p1340_p12 = scmp.lt.s32.totalorder %s1639_s13, %s1338_s10 }
  0x81   : > { %p1335_p5 = pnand %p1333_p3, %p1319_p9  ;;  %p1341_p2 = scmp.lt.s32.totalorder %s1339_s12, %s1332_s30 }
  0x83   : > { %p1336_p7 = pneg %p1335_p5  ;;  %p1342_p1 = por %p1341_p2, %p1340_p12 }
  0x85   : > { %p1343_p13 = pnand %p1342_p1, %p1336_p7 }
  0x87   : > { %1346 = shalt.err (!%p1343_p13)
}
  0x88   : > { %s1430_s16 = smov 128   ;;  %s1431_s6 = smov 8  }
  0x89   : > { %1132 = dma.hbm_to_vmem [thread:$0]  (!%p1641_p11), %s1637_s11, 2048, %s1639_s13, %s1645_s15, %s1430_s16, %s1430_s16, %s1431_s6  }
  0x8a   : > { %p1876_p9 = scmp.ne.s32.totalorder %s1870_s26, 0 }
  0x8b   : > { %s1676_s23 = sand.u32 (!%p1876_p9), 1, %s1413_s19   ;;  %p1877_p0 = scmp.ne.s32.totalorder (!%p1876_p9), %s1868_s24, 0 }
  0x8c   : > { %248 = sbr.rel (%p1876_p9) target bundleno = 682 (0x2aa), region = 40  ;;  %s905_s29 = sshll.u32 (!%p1876_p9), %s1676_s23, 7 }
  0x8d   : > { %s251_s7 = scalar_lea.sflag (!%p1876_p9), [#allocation3], %s1676_s23  ;;  %s1682_s17 = scalar_lea.vmem (!%p1876_p9), [#allocation2], %s905_s29 }
  0x93   : > { %1392 = dma.done.wait (%p1877_p0), %s251_s7, 2048  }
  0x94   : > { %1394 = vsyncadd (%p1877_p0), %s251_s7, 4294965248  ;;  %p1878_p11 = scmp.eq.s32.totalorder %s1486_s22, 0 }
  0x96   : > { %1396 = dma.done.wait (%p1878_p11), [#allocation6], 1040   ;;  %p1879_p6 = pmov %p1878_p11 }
  0x98   : > { %1398 = vsyncadd (%p1879_p6), [#allocation6], 4294966256  ;;  %p1880_p4 = pmov %p1879_p6 }
  0x9a   : > { %1400 = dma.done.wait (%p1880_p4), [#allocation9], 1040   ;;  %p1881_p8 = pmov %p1880_p4 }
  0x9b   : > { %v1189_v0 = vld [vmem:[#allocation5] sm:$0xff]   ;;  %v1190_v1 = vld [vmem:[#allocation5 + $0x8] sm:$0xff]   ;;  %v1191_v2 = vld [vmem:[#allocation5 + $0x10] sm:$0xff]   ;;  %vm596_vm0 = vcmask 261120   ;;  %s1774_s24 = scalar_lea.vmem [#allocation11], %s905_s29  ;;  %s951_s26 = sshll.u32 %s1486_s22, 11 }
  0x9c   : > { %1402 = vsyncadd (%p1881_p8), [#allocation9], 4294966256  ;;  %1000 = vmatprep.subr.bf16.mxu0 %v1189_v0  ;;  %v1192_v3 = vld [vmem:[#allocation5 + $0x18] sm:$0xff]   ;;  %v334_v4 = vld [vmem:[%s1682_s17] sm:$0xff]  ;;  %s783_s11 = sshll.u32 %s1774_s24, 4  ;;  %s1807_s15 = scalar_lea.hbm %s1864_s5, %s951_s26  ;;  %s1809_s11 = int_to_ptr.vmem [resolvable:$true] %s783_s11 }
  0x9d   : > { %1001 = vmatpush3.bf16.msra.mxu0 %v1189_v0  ;;  %v335_v5 = vld [vmem:[%s1682_s17 + $0x8] sm:$0xff]  ;;  %v1193_v7 = vld [vmem:[#allocation5 + $0x20] sm:$0xff]   ;;  %v1705_v11 = vld [vmem:[#allocation8 + $0x10] sm:$0xff]   ;;  %s770_s22 = scalar_lea.sflag [#allocation4], %s1676_s23  ;;  %s1347_s30 = scalar_lea.vmem %s1809_s11, 2048 }
  0x9e   : > { %1002 = vmatprep.subr.bf16.mxu0 %v1190_v1  ;;  %v342_v6 = vpack.c.bf16 %v335_v5, %v334_v4  ;;  %v1698_v8 = vld [vmem:[#allocation8] sm:$0xff]   ;;  %v1700_v9 = vld [vmem:[#allocation8 + $0x8] sm:$0xff]   ;;  %v1709_v13 = vld [vmem:[#allocation8 + $0x18] sm:$0xff]   ;;  %p1348_p3 = scmp.ne.s32.totalorder %s1809_s11, %s1347_s30  ;;  %s1432_s9 = smov [#allocation11]  }
  0x9f   : > { %v1194_v10 = vld [vmem:[#allocation5 + $0x28] sm:$0xff]   ;;  %1024 = vmatprep.subr.bf16.mxu1 %v1698_v8  ;;  %v1195_v12 = vld [vmem:[#allocation5 + $0x30] sm:$0xff]   ;;  %v1196_v14 = vld [vmem:[#allocation5 + $0x38] sm:$0xff]   ;;  %s1351_s10 = sshll.u32 %s1432_s9, 4  ;;  %s1352_s10 = int_to_ptr.vmem [resolvable:$false] %s1351_s10 }
  0xa0   : > { %1016 = vmatprep.mubr.bf16.mxu0 %v342_v6  ;;  %1025 = vmatpush3.bf16.msra.mxu1 %v1698_v8  ;;  %v1713_v15 = vld [vmem:[#allocation8 + $0x20] sm:$0xff]   ;;  %v336_v16 = vld [vmem:[%s1682_s17 + $0x10] sm:$0xff]  ;;  %v337_v17 = vld [vmem:[%s1682_s17 + $0x18] sm:$0xff]  ;;  %p1349_p5 = pnand %p1348_p3, %p1624_p10  ;;  %s1353_s12 = scalar_lea.vmem %s1352_s10, 4096 }
  0xa1   : > { %1003 = vmatpush3.bf16.msra.mxu0 %v1190_v1  ;;  %1026 = vmatprep.subr.bf16.mxu1 %v1700_v9  ;;  %v338_v18 = vld [vmem:[%s1682_s17 + $0x20] sm:$0xff]  ;;  %v339_v19 = vld [vmem:[%s1682_s17 + $0x28] sm:$0xff]  ;;  %v343_v20 = vpack.c.bf16 %v337_v17, %v336_v16  ;;  %v340_v23 = vld [vmem:[%s1682_s17 + $0x30] sm:$0xff]  ;;  %p1354_p12 = scmp.lt.s32.totalorder %s1809_s11, %s1352_s10  ;;  %p1355_p2 = scmp.lt.s32.totalorder %s1353_s12, %s1347_s30 }
  0xa2   : > { %1004 = vmatprep.subr.bf16.mxu0 %v1191_v2  ;;  %v1721_v21 = vld [vmem:[#allocation8 + $0x28] sm:$0xff]   ;;  %v344_v22 = vpack.c.bf16 %v339_v19, %v338_v18  ;;  %v341_v24 = vld [vmem:[%s1682_s17 + $0x38] sm:$0xff]  ;;  %v929_v25 = vld [vmem:[%s1682_s17 + $0x40] sm:$0xff]  ;;  %p1350_p7 = pneg %p1349_p5 }
  0xa3   : > { %v930_v26 = vld [vmem:[%s1682_s17 + $0x48] sm:$0xff]  ;;  %v345_v27 = vpack.c.bf16 %v341_v24, %v340_v23  ;;  %v931_v29 = vld [vmem:[%s1682_s17 + $0x50] sm:$0xff]  ;;  %v932_v30 = vld [vmem:[%s1682_s17 + $0x58] sm:$0xff]  ;;  %p1356_p1 = por %p1355_p2, %p1354_p12 }
  0xa4   : > { %1027 = vmatpush3.bf16.msra.mxu1 %v1700_v9  ;;  %v614_v28 = vpack.c.bf16 %v930_v26, %v929_v25  ;;  %v933_v31 = vld [vmem:[%s1682_s17 + $0x60] sm:$0xff]  ;;  %v934_v32 = vld [vmem:[%s1682_s17 + $0x68] sm:$0xff]  ;;  %v615_v33 = vpack.c.bf16 %v932_v30, %v931_v29  ;;  %v935_v35 = vld [vmem:[%s1682_s17 + $0x70] sm:$0xff] }
  0xa5   : > { %1005 = vmatpush3.bf16.msra.mxu0 %v1191_v2  ;;  %1028 = vmatprep.subr.bf16.mxu1 %v1705_v11  ;;  %v616_v34 = vpack.c.bf16 %v934_v32, %v933_v31  ;;  %v936_v36 = vld [vmem:[%s1682_s17 + $0x78] sm:$0xff]  ;;  %v1741_v40 = vld [vmem:[#allocation7] ss:$0 sm:$0xff]  ;;  %p1357_p13 = pnand %p1356_p1, %p1350_p7 }
  0xa6   : > { %1006 = vmatprep.subr.bf16.mxu0 %v1192_v3  ;;  %v617_v37 = vpack.c.bf16 %v936_v36, %v935_v35  ;;  %v1203_v38 = vld [vmem:[#allocation8 + $0x30] sm:$0xff]   ;;  %v1736_v39 = vld [vmem:[#allocation8 + $0x38] sm:$0xff]  }
  0xa8   : > { %1029 = vmatpush3.bf16.msra.mxu1 %v1705_v11 }
  0xa9   : > { %1007 = vmatpush3.bf16.msra.mxu0 %v1192_v3  ;;  %1030 = vmatprep.subr.bf16.mxu1 %v1709_v13 }
  0xaa   : > { %1008 = vmatprep.subr.bf16.mxu0 %v1193_v7 }
  0xac   : > { %1031 = vmatpush3.bf16.msra.mxu1 %v1709_v13 }
  0xad   : > { %1009 = vmatpush3.bf16.msra.mxu0 %v1193_v7  ;;  %1032 = vmatprep.subr.bf16.mxu1 %v1713_v15 }
  0xae   : > { %1010 = vmatprep.subr.bf16.mxu0 %v1194_v10 }
  0xb0   : > { %1033 = vmatpush3.bf16.msra.mxu1 %v1713_v15 }
  0xb1   : > { %1011 = vmatpush3.bf16.msra.mxu0 %v1194_v10  ;;  %1034 = vmatprep.subr.bf16.mxu1 %v1721_v21 }
  0xb2   : > { %1012 = vmatprep.subr.bf16.mxu0 %v1195_v12 }
  0xb4   : > { %1035 = vmatpush3.bf16.msra.mxu1 %v1721_v21 }
  0xb5   : > { %1013 = vmatpush3.bf16.msra.mxu0 %v1195_v12  ;;  %1036 = vmatprep.subr.bf16.mxu1 %v1203_v38 }
  0xb6   : > { %1014 = vmatprep.subr.bf16.mxu0 %v1196_v14 }
  0xb8   : > { %1037 = vmatpush3.bf16.msra.mxu1 %v1203_v38 }
  0xb9   : > { %1015 = vmatpush3.bf16.msra.mxu0 %v1196_v14  ;;  %1038 = vmatprep.subr.bf16.mxu1 %v1736_v39 }
  0xba   : > { %1048 = vmatprep.subr.bf16.mxu0 %v1189_v0 }
  0xbc   : > { %1017 = vmatmul.mubr.bf16.vlgmr.msra.gmra.mrb[0].mxu0 %v343_v20  ;;  %1039 = vmatpush3.bf16.msra.mxu1 %v1736_v39 }
  0xbd   : > { %1049 = vmatpush3.bf16.msra.mxu0 %v1189_v0  ;;  %1020 = vmatprep.mubr.bf16.mxu0 %v344_v22 }
  0xbe   : > { %1050 = vmatprep.subr.bf16.mxu0 %v1190_v1  ;;  %1072 = vmatprep.subr.bf16.mxu1 %v1698_v8 }
  0xc1   : > { %1051 = vmatpush3.bf16.msra.mxu0 %v1190_v1 }
  0xc2   : > { %1052 = vmatprep.subr.bf16.mxu0 %v1191_v2 }
  0xc4   : > { %1021 = vmatmul.mubr.bf16.gmra.mrb[4].mxu0 %v345_v27 }
  0xc5   : > { %1053 = vmatpush3.bf16.msra.mxu0 %v1191_v2  ;;  %1064 = vmatprep.mubr.bf16.mxu0 %v614_v28 }
  0xc6   : > { %1054 = vmatprep.subr.bf16.mxu0 %v1192_v3 }
  0xc9   : > { %1055 = vmatpush3.bf16.msra.mxu0 %v1192_v3 }
  0xca   : > { %1056 = vmatprep.subr.bf16.mxu0 %v1193_v7 }
  0xcd   : > { %1057 = vmatpush3.bf16.msra.mxu0 %v1193_v7 }
  0xce   : > { %1058 = vmatprep.subr.bf16.mxu0 %v1194_v10 }
  0xd1   : > { %1059 = vmatpush3.bf16.msra.mxu0 %v1194_v10 }
  0xd2   : > { %1060 = vmatprep.subr.bf16.mxu0 %v1195_v12 }
  0xd5   : > { %1061 = vmatpush3.bf16.msra.mxu0 %v1195_v12 }
  0xd6   : > { %1062 = vmatprep.subr.bf16.mxu0 %v1196_v14 }
  0xd9   : > { %1063 = vmatpush3.bf16.msra.mxu0 %v1196_v14 }
  0xdc   : > { %1065 = vmatmul.mubr.bf16.vlgmr.msra.gmra.mrb[8].mxu0 %v615_v33  ;;  %v920_v33 = vld [vmem:[#allocation10] ss:$0 sm:$0xff] }
  0xdd   : > { %1068 = vmatprep.mubr.bf16.mxu0 %v616_v34 }
  0xe4   : > { %1069 = vmatmul.mubr.bf16.gmra.mrb[12].mxu0 %v617_v37 }
 0x18f   : > { %v1018_v41 = vpop.f32.mrb[0].mxu0 }
 0x190   : > { %v443_v42 = vadd.f32 %v1018_v41, %v1741_v40  ;;  %v434_v43 = vpop.f32.mrb[1].mxu0 }
 0x191   : > { %v435_v44 = vadd.f32 %v1741_v40, %v434_v43  ;;  %v1019_v45 = vpop.f32.mrb[2].mxu0 }
 0x192   : > { %v467_v46 = vmax.f32 %v443_v42, 0.0  ;;  %v446_v47 = vadd.f32 %v1019_v45, %v1741_v40  ;;  %v437_v48 = vpop.f32.mrb[3].mxu0 }
 0x193   : > { %v438_v49 = vadd.f32 %v1741_v40, %v437_v48  ;;  %v465_v51 = vmax.f32 %v435_v44, 0.0 }
 0x194   : > { %v468_v50 = vmax.f32 %v446_v47, 0.0 }
 0x195   : > { %v466_v52 = vmax.f32 %v438_v49, 0.0 }
 0x196   : > { %v474_v53 = vpack.c.bf16 %v468_v50, %v467_v46 }
 0x197   : > { %v473_v54 = vpack.c.bf16 %v466_v52, %v465_v51  ;;  %v1022_v55 = vpop.f32.mrb[4].mxu0 }
 0x198   : > { %v459_v56 = vadd.f32 %v1022_v55, %v1741_v40  ;;  %v450_v57 = vpop.f32.mrb[5].mxu0 }
 0x199   : > { %1040 = vmatprep.mubr.bf16.mxu1 %v473_v54  ;;  %v451_v58 = vadd.f32 %v1741_v40, %v450_v57  ;;  %v1023_v59 = vpop.f32.mrb[6].mxu0 }
 0x19a   : > { %1041 = vmatmul.mubr.bf16.vlgmr.msra.gmra.mrb[0].mxu1 %v474_v53  ;;  %v471_v60 = vmax.f32 %v459_v56, 0.0  ;;  %v462_v61 = vadd.f32 %v1023_v59, %v1741_v40  ;;  %v453_v62 = vpop.f32.mrb[7].mxu0 }
 0x19b   : > { %1073 = vmatpush3.bf16.msra.mxu1 %v1698_v8  ;;  %v469_v63 = vmax.f32 %v451_v58, 0.0  ;;  %v454_v0 = vadd.f32 %v1741_v40, %v453_v62 }
 0x19c   : > { %1074 = vmatprep.subr.bf16.mxu1 %v1700_v9  ;;  %v472_v1 = vmax.f32 %v462_v61, 0.0 }
 0x19d   : > { %v470_v2 = vmax.f32 %v454_v0, 0.0 }
 0x19e   : > { %v476_v3 = vpack.c.bf16 %v472_v1, %v471_v60 }
 0x19f   : > { %1075 = vmatpush3.bf16.msra.mxu1 %v1700_v9  ;;  %v475_v4 = vpack.c.bf16 %v470_v2, %v469_v63 }
 0x1a0   : > { %1076 = vmatprep.subr.bf16.mxu1 %v1705_v11 }
 0x1a1   : > { %1044 = vmatprep.mubr.bf16.mxu1 %v475_v4 }
 0x1a2   : > { %1045 = vmatmul.mubr.bf16.gmra.mrb[4].mxu1 %v476_v3 }
 0x1a3   : > { %1077 = vmatpush3.bf16.msra.mxu1 %v1705_v11 }
 0x1a4   : > { %1078 = vmatprep.subr.bf16.mxu1 %v1709_v13 }
 0x1a7   : > { %1079 = vmatpush3.bf16.msra.mxu1 %v1709_v13 }
 0x1a8   : > { %1080 = vmatprep.subr.bf16.mxu1 %v1713_v15 }
 0x1ab   : > { %1081 = vmatpush3.bf16.msra.mxu1 %v1713_v15 }
 0x1ac   : > { %1082 = vmatprep.subr.bf16.mxu1 %v1721_v21 }
 0x1af   : > { %v1066_v5 = vpop.f32.mrb[8].mxu0  ;;  %1083 = vmatpush3.bf16.msra.mxu1 %v1721_v21 }
 0x1b0   : > { %v661_v6 = vadd.f32 %v1066_v5, %v1741_v40  ;;  %v652_v7 = vpop.f32.mrb[9].mxu0  ;;  %1084 = vmatprep.subr.bf16.mxu1 %v1203_v38 }
 0x1b1   : > { %v653_v8 = vadd.f32 %v1741_v40, %v652_v7  ;;  %v1067_v9 = vpop.f32.mrb[10].mxu0 }
 0x1b2   : > { %v664_v10 = vadd.f32 %v1067_v9, %v1741_v40  ;;  %v655_v11 = vpop.f32.mrb[11].mxu0  ;;  %v685_v13 = vmax.f32 %v661_v6, 0.0 }
 0x1b3   : > { %v656_v12 = vadd.f32 %v1741_v40, %v655_v11  ;;  %1085 = vmatpush3.bf16.msra.mxu1 %v1203_v38  ;;  %v683_v15 = vmax.f32 %v653_v8, 0.0 }
 0x1b4   : > { %v686_v14 = vmax.f32 %v664_v10, 0.0  ;;  %1086 = vmatprep.subr.bf16.mxu1 %v1736_v39 }
 0x1b5   : > { %v684_v16 = vmax.f32 %v656_v12, 0.0 }
 0x1b6   : > { %v692_v17 = vpack.c.bf16 %v686_v14, %v685_v13 }
 0x1b7   : > { %v691_v18 = vpack.c.bf16 %v684_v16, %v683_v15  ;;  %v1070_v19 = vpop.f32.mrb[12].mxu0  ;;  %1087 = vmatpush3.bf16.msra.mxu1 %v1736_v39 }
 0x1b8   : > { %v677_v20 = vadd.f32 %v1070_v19, %v1741_v40  ;;  %v668_v21 = vpop.f32.mrb[13].mxu0 }
 0x1b9   : > { %v669_v22 = vadd.f32 %v1741_v40, %v668_v21  ;;  %v1071_v23 = vpop.f32.mrb[14].mxu0  ;;  %1088 = vmatprep.mubr.bf16.mxu1 %v691_v18 }
 0x1ba   : > { %v680_v24 = vadd.f32 %v1071_v23, %v1741_v40  ;;  %v671_v25 = vpop.f32.mrb[15].mxu0  ;;  %1089 = vmatmul.mubr.bf16.vlgmr.msra.gmra.mrb[8].mxu1 %v692_v17  ;;  %v689_v27 = vmax.f32 %v677_v20, 0.0 }
 0x1bb   : > { %v672_v26 = vadd.f32 %v1741_v40, %v671_v25  ;;  %v687_v29 = vmax.f32 %v669_v22, 0.0 }
 0x1bc   : > { %v690_v28 = vmax.f32 %v680_v24, 0.0 }
 0x1bd   : > { %v688_v30 = vmax.f32 %v672_v26, 0.0 }
 0x1be   : > { %v694_v31 = vpack.c.bf16 %v690_v28, %v689_v27 }
 0x1bf   : > { %v693_v32 = vpack.c.bf16 %v688_v30, %v687_v29 }
 0x1c1   : > { %1092 = vmatprep.mubr.bf16.mxu1 %v693_v32 }
 0x1c2   : > { %1093 = vmatmul.mubr.bf16.gmra.mrb[12].mxu1 %v694_v31 }
 0x26d   : > { %v1042_v34 = vpop.f32.mrb[0].mxu1 }
 0x26e   : > { %v574_v35 = vadd.f32 %v1042_v34, %v920_v33  ;;  %v565_v36 = vpop.f32.mrb[1].mxu1 }
 0x26f   : > { %v566_v37 = vadd.f32 %v920_v33, %v565_v36  ;;  %v1043_v38 = vpop.f32.mrb[2].mxu1 }
 0x270   : > { %599 = vst.msk [vmem:[%s1774_s24 + $0x10] sm:$0xff] %vm596_vm0, %v574_v35  ;;  %v577_v39 = vadd.f32 %v1043_v38, %v920_v33  ;;  %v568_v40 = vpop.f32.mrb[3].mxu1 }
 0x271   : > { %597 = vst.msk [vmem:[%s1774_s24] sm:$0xff] %vm596_vm0, %v566_v37  ;;  %v569_v41 = vadd.f32 %v920_v33, %v568_v40 }
 0x272   : > { %600 = vst.msk [vmem:[%s1774_s24 + $0x18] sm:$0xff] %vm596_vm0, %v577_v39 }
 0x273   : > { %598 = vst.msk [vmem:[%s1774_s24 + $0x8] sm:$0xff] %vm596_vm0, %v569_v41 }
 0x275   : > { %v1046_v42 = vpop.f32.mrb[4].mxu1 }
 0x276   : > { %v590_v43 = vadd.f32 %v1046_v42, %v920_v33  ;;  %v581_v44 = vpop.f32.mrb[5].mxu1 }
 0x277   : > { %v582_v45 = vadd.f32 %v920_v33, %v581_v44  ;;  %v1047_v46 = vpop.f32.mrb[6].mxu1 }
 0x278   : > { %603 = vst.msk [vmem:[%s1774_s24 + $0x30] sm:$0xff] %vm596_vm0, %v590_v43  ;;  %v593_v47 = vadd.f32 %v1047_v46, %v920_v33  ;;  %v584_v48 = vpop.f32.mrb[7].mxu1 }
 0x279   : > { %601 = vst.msk [vmem:[%s1774_s24 + $0x20] sm:$0xff] %vm596_vm0, %v582_v45  ;;  %v585_v49 = vadd.f32 %v920_v33, %v584_v48 }
 0x27a   : > { %604 = vst.msk [vmem:[%s1774_s24 + $0x38] sm:$0xff] %vm596_vm0, %v593_v47 }
 0x27b   : > { %602 = vst.msk [vmem:[%s1774_s24 + $0x28] sm:$0xff] %vm596_vm0, %v585_v49 }
 0x28d   : > { %v1090_v50 = vpop.f32.mrb[8].mxu1 }
 0x28e   : > { %v738_v51 = vadd.f32 %v1090_v50, %v920_v33  ;;  %v729_v52 = vpop.f32.mrb[9].mxu1 }
 0x28f   : > { %v730_v53 = vadd.f32 %v920_v33, %v729_v52  ;;  %v1091_v54 = vpop.f32.mrb[10].mxu1 }
 0x290   : > { %939 = vst.msk [vmem:[%s1774_s24 + $0x50] sm:$0xff] %vm596_vm0, %v738_v51  ;;  %v741_v55 = vadd.f32 %v1091_v54, %v920_v33  ;;  %v732_v56 = vpop.f32.mrb[11].mxu1 }
 0x291   : > { %937 = vst.msk [vmem:[%s1774_s24 + $0x40] sm:$0xff] %vm596_vm0, %v730_v53  ;;  %v733_v57 = vadd.f32 %v920_v33, %v732_v56 }
 0x292   : > { %940 = vst.msk [vmem:[%s1774_s24 + $0x58] sm:$0xff] %vm596_vm0, %v741_v55 }
 0x293   : > { %938 = vst.msk [vmem:[%s1774_s24 + $0x48] sm:$0xff] %vm596_vm0, %v733_v57 }
 0x295   : > { %v1094_v58 = vpop.f32.mrb[12].mxu1 }
 0x296   : > { %v754_v59 = vadd.f32 %v1094_v58, %v920_v33  ;;  %v745_v60 = vpop.f32.mrb[13].mxu1 }
 0x297   : > { %v746_v61 = vadd.f32 %v920_v33, %v745_v60  ;;  %v1095_v62 = vpop.f32.mrb[14].mxu1 }
 0x298   : > { %943 = vst.msk [vmem:[%s1774_s24 + $0x70] sm:$0xff] %vm596_vm0, %v754_v59  ;;  %v757_v63 = vadd.f32 %v1095_v62, %v920_v33  ;;  %v748_v0 = vpop.f32.mrb[15].mxu1 }
 0x299   : > { %941 = vst.msk [vmem:[%s1774_s24 + $0x60] sm:$0xff] %vm596_vm0, %v746_v61  ;;  %v749_v1 = vadd.f32 %v920_v33, %v748_v0 }
 0x29a   : > { %944 = vst.msk [vmem:[%s1774_s24 + $0x78] sm:$0xff] %vm596_vm0, %v757_v63 }
 0x29b   : > { %942 = vst.msk [vmem:[%s1774_s24 + $0x68] sm:$0xff] %vm596_vm0, %v749_v1 }
 0x29c   : > { %1360 = shalt.err (!%p1357_p13)
}
 0x29d   : > { %s1361_s16 = scalar_lea.hbm %s1807_s15, 2048  ;;  %s1365_s7 = scalar_lea.hbm %s1864_s5, 4096 }
 0x29e   : > { %p1362_p9 = scmp.ne.s32.totalorder %s1807_s15, %s1361_s16  ;;  %p1366_p6 = scmp.lt.u32.totalorder %s1807_s15, %s1864_s5 }
 0x29f   : > { %p1367_p4 = scmp.lt.u32.totalorder %s1365_s7, %s1361_s16  ;;  %p1369_p3 = scmp.lt.u32.totalorder %s1361_s16, %s1807_s15 }
 0x2a0   : > { %p1363_p0 = pnand %p1362_p9, %p1624_p10 }
 0x2a1   : > { %p1368_p8 = por %p1367_p4, %p1366_p6 }
 0x2a2   : > { %p1364_p11 = pneg %p1363_p0 }
 0x2a3   : > { %p1370_p5 = por %p1369_p3, %p1368_p8 }
 0x2a5   : > { %p1371_p7 = pnand %p1370_p5, %p1364_p11 }
 0x2a7   : > { %1374 = shalt.err (!%p1371_p7)
}
 0x2a8   : > { %s1433_s26 = smov 128   ;;  %s1434_s13 = smov 8  }
 0x2a9   : > { %1114 = dma.vmem_to_hbm [thread:$0]  (%p1624_p10), %s1809_s11, 2048, %s1807_s15, %s770_s22, %s1433_s26, %s1433_s26, %s1434_s13  }
 0x2aa PF: > { %s798_s8 = sand.u32 1, %s1409_s18   ;;  %p1882_p12 = scmp.ne.s32.totalorder %s1869_s25, 0 }
 0x2ab   : > { %p1883_p2 = scmp.ge.s32.totalorder %s1421_s21, 2  ;;  %s799_s30 = scalar_lea.sflag [#allocation4], %s798_s8 }
 0x2ad   : > { %p1134_p1 = pnand %p1883_p2, %p1882_p12 }
 0x2af   : > { %1404 = dma.done.wait (!%p1134_p1), %s799_s30, 2048  }
 0x2b0   : > { %1406 = vsyncadd (!%p1134_p1), %s799_s30, 4294965248  ;;  %p20_p13 = scmp.ge.s32.totalorder %s1614_s14, 4   ;;  %s1884_s18 = smov %s1413_s19 }
 0x2b1   : > { %s1885_s19 = smov %s1417_s20  ;;  %s1886_s20 = smov %s1630_s28 }
 0x2b2   : > { %s1887_s21 = smov %s1614_s14  ;;  %22 = sbr.rel (!%p20_p13) target bundleno = 7 (0x7), region = 103 }
 0x2b9   :  { %804 = vsyncpa [#allocation3], 1 }
 0x2ba   :  { %806 = vsyncpa [#allocation3 + $0x1], 1 }
 0x2bb   :  { %807 = vsyncpa [#allocation6], 1 }
 0x2bc   :  { %808 = vsyncpa [#allocation9], 1 }
 0x2bd   :  { %809 = vsyncpa [#allocation4], 1 }
 0x2be   :  { %811 = vsyncpa [#allocation4 + $0x1], 1 }

</bundles_post_ra>
